<compile_context>
chip_gen: v5e
topology: v5e:2x2
jax: 0.10.0
libtpu: 0.0.40
codegen_flags: <defaults>
</compile_context>

<pallas_src>
import numpy as np
import jax
import jax.numpy as jnp
from jax import lax
from jax.experimental import pallas as pl
from jax.experimental.pallas import tpu as pltpu

FIELD_DIMS = (8, 8, 8, 8)   # num_fields = 4, sum(field_dims) = 32
EMBED_DIM = 32


def _round_up(x, m):
    return (x + m - 1) // m * m


def _make_ffm_kernel(F, V, D, P, P_pad):
    pad_cols = (P_pad - P) * D

    def kernel(idx_ref, wp_ref, out_ref):
        # idx_ref: VMEM (TB, F) int32  -- offset-shifted, clipped row indices
        # wp_ref : VMEM (V, F*D) f32   -- packed tables (row v = all F tables at v)
        # out_ref: VMEM (TB, P_pad*D) f32 -- lane-dense output slab
        TB = idx_ref.shape[0]
        idx = idx_ref[...]                                    # (TB, F)
        wp = wp_ref[...]                                      # (V, F*D)
        iota_v = lax.broadcasted_iota(jnp.int32, (TB, V), 1)  # (TB, V)

        # One-hot MXU gathers: g[f][b, :] = wp[idx[b, f], :]   -> (TB, F*D)
        g = []
        for f in range(F):
            onehot = (idx[:, f:f + 1] == iota_v).astype(wp.dtype)      # (TB, V)
            g.append(jnp.dot(onehot, wp, preferred_element_type=jnp.float32))

        # Pair products batched over the whole block: P x (TB, D) VPU multiplies.
        prods = []
        for i in range(F - 1):
            for j in range(i + 1, F):
                vi = g[i][:, j * D:(j + 1) * D]   # tables[j][idx[:, i]] == xs[j][:, i]
                vj = g[j][:, i * D:(i + 1) * D]   # tables[i][idx[:, j]] == xs[i][:, j]
                prods.append(vi * vj)
        if pad_cols:
            prods.append(jnp.zeros((TB, pad_cols), jnp.float32))

        # One lane-concat + one dense (TB, P_pad*D) store per grid step.
        out_ref[...] = jnp.concatenate(prods, axis=-1).astype(out_ref.dtype)

    return kernel


def _choose_tb(B, tb):
    TB = min(_round_up(tb, 8), _round_up(B, 8))
    # Keep >= 2 grid steps when the batch allows it so the "parallel" batch
    # axis can actually shard across both TensorCores on v7x.
    while B > 8 and -(-B // TB) < 2 and TB > 8:
        TB = _round_up(-(-TB // 2), 8)
    return TB


def ffm_forward(x_idx, tables, field_dims, *, tb=256):
    """x_idx: (B, F) int indices; tables: (F, V, D) float32.  Returns (B, P, D)."""
    B, F = x_idx.shape
    Fw, V, D = tables.shape
    assert Fw == F == len(field_dims)
    P = F * (F - 1) // 2
    assert 128 % D == 0, "embed_dim must divide 128 for the lane-dense layout"
    P_pad = _round_up(max(P, 1), 128 // D)          # pad pair axis -> lane multiple

    TB = _choose_tb(B, tb)
    B_pad = _round_up(B, TB)

    offsets = jnp.asarray(
        np.concatenate(([0], np.cumsum(np.asarray(field_dims))[:-1])), jnp.int32
    )
    # Offset-shift + clamp (PyTorch embedding would raise on OOB; we clamp).
    idx = jnp.clip(x_idx.astype(jnp.int32) + offsets[None, :], 0, V - 1)
    if B_pad != B:
        idx = jnp.pad(idx, ((0, B_pad - B), (0, 0)))   # padded rows -> row 0, discarded

    # Pack tables lane-dense: wp[v, f*D:(f+1)*D] = tables[f, v, :]
    wp = jnp.transpose(tables, (1, 0, 2)).reshape(V, F * D)

    out = pl.pallas_call(
        _make_ffm_kernel(F, V, D, P, P_pad),
        grid=(B_pad // TB,),
        in_specs=[
            pl.BlockSpec((TB, F), lambda b: (b, 0)),       # blocked indices (VMEM)
            pl.BlockSpec((V, F * D), lambda b: (0, 0)),    # resident packed table
        ],
        out_specs=pl.BlockSpec((TB, P_pad * D), lambda b: (b, 0)),
        out_shape=jax.ShapeDtypeStruct((B_pad, P_pad * D), tables.dtype),
        compiler_params=pltpu.CompilerParams(
            dimension_semantics=("parallel",),             # batch blocks independent
        ),
    )(idx, wp)

    return out.reshape(B_pad, P_pad, D)[:B, :P, :]


def ffm_reference(x_idx, tables, field_dims):
    """Pure-JAX replica of the PyTorch forward for verification."""
    F = len(field_dims)
    offsets = jnp.asarray(
        np.concatenate(([0], np.cumsum(np.asarray(field_dims))[:-1])), jnp.int32
    )
    idx = x_idx.astype(jnp.int32) + offsets[None, :]
    xs = [tables[f][idx] for f in range(F)]              # each (B, F, D)
    ix = []
    for i in range(F - 1):
        for j in range(i + 1, F):
            ix.append(xs[j][:, i] * xs[i][:, j])
    return jnp.stack(ix, axis=1)                          # (B, P, D)


if __name__ == "__main__":
    key = jax.random.PRNGKey(0)
    B = 50                                                # non-multiple of TB: exercises padding
    F = len(FIELD_DIMS)
    V = int(sum(FIELD_DIMS))
    D = EMBED_DIM

    k_tab, *k_fields = jax.random.split(key, F + 1)

    # Deterministic xavier_uniform-style init for the F stacked embedding tables.
    bound = float(np.sqrt(6.0 / (V + D)))
    tables = jax.random.uniform(
        k_tab, (F, V, D), minval=-bound, maxval=bound, dtype=jnp.float32
    )

    # Input: (B, F) indices, each within its own field's vocabulary.
    cols = [
        jax.random.randint(k_fields[f], (B,), 0, FIELD_DIMS[f], dtype=jnp.int32)
        for f in range(F)
    ]
    x_idx = jnp.stack(cols, axis=1)                       # (B, F)

    out = ffm_forward(x_idx, tables, FIELD_DIMS, tb=256)
    out = jax.block_until_ready(out)

    ref = ffm_reference(x_idx, tables, FIELD_DIMS)
    assert out.shape == (B, F * (F - 1) // 2, D), out.shape
    assert jnp.allclose(out, ref, atol=1e-5, rtol=1e-5), "mismatch vs reference"

    print("KERNEL_OK")
</pallas_src>

<mosaic_0001>
module attributes {stable_mosaic.version = 11 : i64} {
  func.func @kernel(%arg0: i32, %arg1: memref<32x4xi32, #tpu.memory_space<vmem>>, %arg2: memref<32x128xf32, #tpu.memory_space<vmem>>, %arg3: memref<32x256xf32, #tpu.memory_space<vmem>>) attributes {dimension_semantics = [#tpu.dimension_semantics<parallel>], iteration_bounds = array<i64: 2>, scalar_prefetch = 0 : i64, scratch_operands = 0 : i64, tpu.core_type = #tpu.core_type<tc>, window_params = [{transform_indices = @transform_0, window_bounds = array<i64: 32, 4>}, {pipeline_mode = #tpu.pipeline_mode<synchronous>, transform_indices = @transform_1, window_bounds = array<i64: 32, 128>}, {transform_indices = @transform_2, window_bounds = array<i64: 32, 256>}]} {
    %c0 = arith.constant 0 : index
    %c0_0 = arith.constant 0 : index
    %0 = vector.load %arg1[%c0, %c0_0] : memref<32x4xi32, #tpu.memory_space<vmem>>, vector<32x4xi32>
    %c0_1 = arith.constant 0 : index
    %c0_2 = arith.constant 0 : index
    %1 = vector.load %arg2[%c0_1, %c0_2] : memref<32x128xf32, #tpu.memory_space<vmem>>, vector<32x128xf32>
    %2 = tpu.iota {dimensions = array<i32: 1>} : vector<32x32xi32>
    %3 = vector.extract_strided_slice %0 {offsets = [0, 0], sizes = [32, 1], strides = [1, 1]} : vector<32x4xi32> to vector<32x1xi32>
    %4 = vector.broadcast %3 : vector<32x1xi32> to vector<32x32xi32>
    %5 = arith.cmpi eq, %4, %2 : vector<32x32xi32>
    %6 = arith.extui %5 : vector<32x32xi1> to vector<32x32xi32>
    %7 = arith.sitofp %6 : vector<32x32xi32> to vector<32x32xf32>
    %cst = arith.constant dense<0.000000e+00> : vector<32x128xf32>
    %8 = tpu.matmul %7, %1, %cst {dimension_numbers = #tpu.dot_dimension_numbers<[1], [0], [0], [1], [0, 0, 1, 1], [], []>} : vector<32x32xf32>, vector<32x128xf32>, vector<32x128xf32> -> vector<32x128xf32>
    %9 = vector.extract_strided_slice %0 {offsets = [0, 1], sizes = [32, 1], strides = [1, 1]} : vector<32x4xi32> to vector<32x1xi32>
    %10 = vector.broadcast %9 : vector<32x1xi32> to vector<32x32xi32>
    %11 = arith.cmpi eq, %10, %2 : vector<32x32xi32>
    %12 = arith.extui %11 : vector<32x32xi1> to vector<32x32xi32>
    %13 = arith.sitofp %12 : vector<32x32xi32> to vector<32x32xf32>
    %cst_3 = arith.constant dense<0.000000e+00> : vector<32x128xf32>
    %14 = tpu.matmul %13, %1, %cst_3 {dimension_numbers = #tpu.dot_dimension_numbers<[1], [0], [0], [1], [0, 0, 1, 1], [], []>} : vector<32x32xf32>, vector<32x128xf32>, vector<32x128xf32> -> vector<32x128xf32>
    %15 = vector.extract_strided_slice %0 {offsets = [0, 2], sizes = [32, 1], strides = [1, 1]} : vector<32x4xi32> to vector<32x1xi32>
    %16 = vector.broadcast %15 : vector<32x1xi32> to vector<32x32xi32>
    %17 = arith.cmpi eq, %16, %2 : vector<32x32xi32>
    %18 = arith.extui %17 : vector<32x32xi1> to vector<32x32xi32>
    %19 = arith.sitofp %18 : vector<32x32xi32> to vector<32x32xf32>
    %cst_4 = arith.constant dense<0.000000e+00> : vector<32x128xf32>
    %20 = tpu.matmul %19, %1, %cst_4 {dimension_numbers = #tpu.dot_dimension_numbers<[1], [0], [0], [1], [0, 0, 1, 1], [], []>} : vector<32x32xf32>, vector<32x128xf32>, vector<32x128xf32> -> vector<32x128xf32>
    %21 = vector.extract_strided_slice %0 {offsets = [0, 3], sizes = [32, 1], strides = [1, 1]} : vector<32x4xi32> to vector<32x1xi32>
    %22 = vector.broadcast %21 : vector<32x1xi32> to vector<32x32xi32>
    %23 = arith.cmpi eq, %22, %2 : vector<32x32xi32>
    %24 = arith.extui %23 : vector<32x32xi1> to vector<32x32xi32>
    %25 = arith.sitofp %24 : vector<32x32xi32> to vector<32x32xf32>
    %cst_5 = arith.constant dense<0.000000e+00> : vector<32x128xf32>
    %26 = tpu.matmul %25, %1, %cst_5 {dimension_numbers = #tpu.dot_dimension_numbers<[1], [0], [0], [1], [0, 0, 1, 1], [], []>} : vector<32x32xf32>, vector<32x128xf32>, vector<32x128xf32> -> vector<32x128xf32>
    %27 = vector.extract_strided_slice %8 {offsets = [0, 32], sizes = [32, 32], strides = [1, 1]} : vector<32x128xf32> to vector<32x32xf32>
    %28 = vector.extract_strided_slice %14 {offsets = [0, 0], sizes = [32, 32], strides = [1, 1]} : vector<32x128xf32> to vector<32x32xf32>
    %29 = arith.mulf %27, %28 : vector<32x32xf32>
    %30 = vector.extract_strided_slice %8 {offsets = [0, 64], sizes = [32, 32], strides = [1, 1]} : vector<32x128xf32> to vector<32x32xf32>
    %31 = vector.extract_strided_slice %20 {offsets = [0, 0], sizes = [32, 32], strides = [1, 1]} : vector<32x128xf32> to vector<32x32xf32>
    %32 = arith.mulf %30, %31 : vector<32x32xf32>
    %33 = vector.extract_strided_slice %8 {offsets = [0, 96], sizes = [32, 32], strides = [1, 1]} : vector<32x128xf32> to vector<32x32xf32>
    %34 = vector.extract_strided_slice %26 {offsets = [0, 0], sizes = [32, 32], strides = [1, 1]} : vector<32x128xf32> to vector<32x32xf32>
    %35 = arith.mulf %33, %34 : vector<32x32xf32>
    %36 = vector.extract_strided_slice %14 {offsets = [0, 64], sizes = [32, 32], strides = [1, 1]} : vector<32x128xf32> to vector<32x32xf32>
    %37 = vector.extract_strided_slice %20 {offsets = [0, 32], sizes = [32, 32], strides = [1, 1]} : vector<32x128xf32> to vector<32x32xf32>
    %38 = arith.mulf %36, %37 : vector<32x32xf32>
    %39 = vector.extract_strided_slice %14 {offsets = [0, 96], sizes = [32, 32], strides = [1, 1]} : vector<32x128xf32> to vector<32x32xf32>
    %40 = vector.extract_strided_slice %26 {offsets = [0, 32], sizes = [32, 32], strides = [1, 1]} : vector<32x128xf32> to vector<32x32xf32>
    %41 = arith.mulf %39, %40 : vector<32x32xf32>
    %42 = vector.extract_strided_slice %20 {offsets = [0, 96], sizes = [32, 32], strides = [1, 1]} : vector<32x128xf32> to vector<32x32xf32>
    %43 = vector.extract_strided_slice %26 {offsets = [0, 64], sizes = [32, 32], strides = [1, 1]} : vector<32x128xf32> to vector<32x32xf32>
    %44 = arith.mulf %42, %43 : vector<32x32xf32>
    %cst_6 = arith.constant 0.000000e+00 : f32
    %45 = vector.broadcast %cst_6 : f32 to vector<32x64xf32>
    %46 = tpu.concatenate %29, %32, %35, %38, %41, %44, %45 in 1 : vector<32x32xf32>, vector<32x32xf32>, vector<32x32xf32>, vector<32x32xf32>, vector<32x32xf32>, vector<32x32xf32>, vector<32x64xf32> -> vector<32x256xf32>
    %c0_7 = arith.constant 0 : index
    %c0_8 = arith.constant 0 : index
    %47 = vector.load %arg3[%c0_7, %c0_8] : memref<32x256xf32, #tpu.memory_space<vmem>>, vector<32x256xf32>
    tpu.vector_store %arg3[%c0_7, %c0_8], %46 {strides = array<i32>} : memref<32x256xf32, #tpu.memory_space<vmem>>, vector<32x256xf32>,
    return
  }
  func.func @transform_0(%arg0: i32) -> (i32, i32) {
    %c0_i32 = arith.constant 0 : i32
    %c0_i32_0 = arith.constant 0 : i32
    return %arg0, %c0_i32 : i32, i32
  }
  func.func @transform_1(%arg0: i32) -> (i32, i32) {
    %c0_i32 = arith.constant 0 : i32
    %c0_i32_0 = arith.constant 0 : i32
    %c0_i32_1 = arith.constant 0 : i32
    return %c0_i32, %c0_i32_0 : i32, i32
  }
  func.func @transform_2(%arg0: i32) -> (i32, i32) {
    %c0_i32 = arith.constant 0 : i32
    %c0_i32_0 = arith.constant 0 : i32
    return %arg0, %c0_i32 : i32, i32
  }
}

</mosaic_0001>

<bundles_post_ra>
// kernel: tpu_custom_call.1
= control target key start
LH: loop header
LB: loop body
LE: loop exit
PB: predicated region body
PF: predicated region fallthrough
CT: control target
= control target key end

     0   :  { %7 = vsyncpa [#allocation3], 0  ;;  %s1171_s0 = inlined_call_operand.vmem [shape: s32[64,4], index: 0, kind: input, shape index: {}]   ;;  %s1172_s1 = inlined_call_operand.vmem [shape: f32[32,128], index: 1, kind: input, shape index: {}]   ;;  %s1173_s2 = inlined_call_operand.hbm [shape: f32[64,256], index: 2, kind: output, shape index: {}]  }
   0x1   :  { %9 = vsyncpa [#allocation3 + $0x1], 0  ;;  %s927_s9 = smov 0   ;;  %s929_s10 = smov 0  }
   0x2   :  { %s931_s11 = smov 0   ;;  %s933_s12 = smov 0  }
   0x3 LB: > { %s948_s13 = sadd.s32 4294967295, %s900_s12   ;;  %s729_s14 = sadd.s32 4294967294, %s900_s12   ;;  %s900_s12 = sphi %s933_s12, %s1179_s12   ;;  %s896_s11 = sphi %s931_s11, %s1178_s11   ;;  %s892_s10 = sphi %s929_s10, %s1177_s10   ;;  %s888_s9 = sphi %s927_s9, %s1176_s9  }
   0x4   : > { %s952_s15 = sadd.s32 1, %s900_s12   ;;  %s69_s16 = sadd.s32 1, %s896_s11 }
   0x5   : > { %s66_s17 = ssub.s32 %s900_s12, %s952_s15  ;;  %p79_p0 = scmp.ne.s32.totalorder %s896_s11, %s892_s10 }
   0x6   : > { %p67_p1 = scmp.eq.s32.totalorder %s66_s17, 0  ;;  %p80_p2 = scmp.eq.s32.totalorder %s948_s13, 1 }
   0x7   : > { %p85_p3 = scmp.ne.s32.totalorder %s892_s10, %s888_s9  ;;  %p86_p4 = scmp.eq.s32.totalorder %s729_s14, 1 }
   0x8   : > { %s963_s18 = scalar_select %p67_p1, %s896_s11, %s69_s16  }
   0x9   : > { %p965_p5 = por %p80_p2, %p79_p0  ;;  %p969_p6 = por %p86_p4, %p85_p3 }
   0xa   : > { %p732_p7 = scmp.ge.s32.totalorder %s900_s12, 1  ;;  %p116_p8 = scmp.lt.s32.totalorder %s900_s12, 3 }
   0xc   : > { %p117_p9 = pnand %p732_p7, %p116_p8 }
   0xd   : > { %s734_s21 = sshll.u32 (!%p117_p9), %s948_s13, 2  ;;  %s907_s6 = smov (!%p117_p9), 32  }
   0xe   : > { %120 = sbr.rel (%p117_p9) target bundleno = 575 (0x23f), region = 28  ;;  %p139_p10 = scmp.lt.s32.totalorder (!%p117_p9), %s734_s21, 7 }
   0xf   : > { %s908_s7 = smov (!%p117_p9), 64   ;;  %s909_s8 = smov (!%p117_p9), 96  }
  0x10   : > { %s135_s14 = sand.u32 (!%p117_p9), 1, %s892_s10   ;;  %s858_s3 = scalar_lea.hbm (!%p117_p9), %s1173_s2, 128 }
  0x11   : > { %s733_s16 = sshll.u32 (!%p117_p9), %s135_s14, 6 }
  0x12   : > { %s1109_s17 = scalar_lea.vmem (!%p117_p9), [#allocation2], %s733_s16 }
  0x13   : > { %v902_v0 = vmov 2   ;;  %v903_v1 = vmov 1   ;;  %v904_v2 = vmov 3   ;;  %s1181_s21 = smov (!%p139_p10, %s734_s21), 7  ;;  %v152_v5 = vld [vmem:[%s1172_s1 + $0x18] sm:$0xff]  ;;  %v151_v6 = vld [vmem:[%s1172_s1 + $0x10] sm:$0xff]  ;;  %v153_v14 = vlaneseq }
  0x14   : > { %825 = vset.pattern.permute.xlu0 %v902_v0  ;;  %827 = vset.pattern.permute.xlu1 %v903_v1  ;;  %s735_s22 = sshll.u32 %s1181_s21, 3  ;;  %v150_v7 = vld [vmem:[%s1172_s1 + $0x8] sm:$0xff]  ;;  %v905_v10 = vmov 0   ;;  %v149_v11 = vld [vmem:[%s1172_s1] sm:$0xff]  ;;  %vm179_vm0 = vcmask 261120   ;;  %v906_v19 = vmov 0.0  }
  0x15   : > { %829 = vset.pattern.permute.xlu2 %v904_v2  ;;  %s979_s25 = scalar_lea.vmem %s1171_s0, %s735_s22  ;;  %269 = vmatpush.msra.mxu1 %v152_v5  ;;  %v997_v16 = vand.u32 127, %v153_v14  ;;  %s775_s21 = sshll.u32 %s948_s13, 6 }
  0x16   : > { %v145_v3 = vld [vmem:[%s979_s25] sm:$0xff]  ;;  %v146_v4 = vld [vmem:[%s979_s25 + $0x8] sm:$0xff]  ;;  %334 = vmatpush.msra.mxu2 %v152_v5  ;;  %399 = vmatpush.msra.mxu3 %v152_v5  ;;  %v147_v8 = vld [vmem:[%s979_s25 + $0x10] sm:$0xff]  ;;  %s663_s24 = scalar_lea.hbm %s1173_s2, %s775_s21  ;;  %s651_s13 = scalar_lea.sflag [#allocation3], %s135_s14 }
  0x17   : > { %222 = vperm.xlu1 %827, %v145_v3   ;;  %287 = vperm.xlu0 %825, %v145_v3   ;;  %v148_v9 = vld [vmem:[%s979_s25 + $0x18] sm:$0xff]  ;;  %s664_s25 = sshll.u32 %s1109_s17, 4  ;;  %s666_s26 = sshll.u32 %s663_s24, 4  ;;  %s665_s25 = int_to_ptr.vmem [resolvable:$true] %s664_s25  ;;  %s667_s26 = int_to_ptr.hbm [resolvable:$true] %s666_s26 }
  0x18   : > { %355 = vperm.xlu2 %829, %v146_v4   ;;  %204 = vmatpush.msra.mxu0 %v152_v5  ;;  %s852_s27 = sshra.s32 %s667_s26, 4  ;;  %s853_s27 = int_to_ptr.hbm [resolvable:$true] %s852_s27 }
  0x19   : > { %270 = vmatpush.msra.mxu1 %v151_v6  ;;  %335 = vmatpush.msra.mxu2 %v151_v6  ;;  %s854_s28 = scalar_lea.hbm %s853_s27, 64  ;;  %p859_p0 = scmp.lt.s32.totalorder %s853_s27, %s1173_s2 }
  0x1a   : > { %400 = vmatpush.msra.mxu3 %v151_v6  ;;  %205 = vmatpush.msra.mxu0 %v151_v6  ;;  %p855_p11 = scmp.ne.s32.totalorder %s853_s27, %s854_s28  ;;  %p860_p1 = scmp.lt.s32.totalorder %s858_s3, %s854_s28 }
  0x1b   : > { %271 = vmatpush.msra.mxu1 %v150_v7  ;;  %336 = vmatpush.msra.mxu2 %v150_v7 }
  0x1c   : > { %401 = vmatpush.msra.mxu3 %v150_v7  ;;  %206 = vmatpush.msra.mxu0 %v150_v7  ;;  %p856_p12 = pnand %p855_p11, %p965_p5  ;;  %p861_p2 = por %p860_p1, %p859_p0 }
  0x1d   : > { %272 = vmatpush.msra.mxu1 %v149_v11  ;;  %337 = vmatpush.msra.mxu2 %v149_v11 }
  0x1e   : > { %402 = vmatpush.msra.mxu3 %v149_v11  ;;  %207 = vmatpush.msra.mxu0 %v149_v11  ;;  %p857_p13 = pneg %p856_p12 }
  0x1f   : > { %828 = vset.pattern.permute.xlu1 %v902_v0  ;;  %826 = vset.pattern.permute.xlu0 %v904_v2 }
  0x20   : > { %290 = vperm.xlu1 %828, %v146_v4   ;;  %352 = vperm.xlu0 %826, %v145_v3   ;;  %p862_p3 = pnand %p861_p2, %p857_p13 }
  0x21   : > { %830 = vset.pattern.permute.xlu2 %v903_v1 }
  0x22   : > { %225 = vperm.xlu2 %830, %v146_v4  }
  0x28   : > { %293 = vperm.xlu1 %828, %v147_v8   ;;  %832 = vset.pattern.permute.xlu0 %v903_v1 }
  0x29   : > { %228 = vperm.xlu0 %832, %v147_v8  }
  0x2a   : > { %831 = vset.pattern.permute.xlu2 %v904_v2 }
  0x2b   : > { %358 = vperm.xlu2 %831, %v147_v8  }
  0x30   : > { %296 = vperm.xlu1 %828, %v148_v9  }
  0x31   : > { %835 = vset.pattern.permute.xlu0 %v905_v10 }
  0x32   : > { %159 = vperm.xlu0 %835, %v146_v4  }
  0x33   : > { %361 = vperm.xlu2 %831, %v148_v9  }
  0x38   : > { %833 = vset.pattern.permute.xlu1 %v903_v1 }
  0x39   : > { %231 = vperm.xlu1 %833, %v148_v9  }
  0x3a   : > { %837 = vset.pattern.permute.xlu0 %v904_v2 }
  0x3b   : > { %834 = vset.pattern.permute.xlu2 %v905_v10 }
  0x3c   : > { %156 = vperm.xlu2 %834, %v145_v3  }
  0x41   : > { %836 = vset.pattern.permute.xlu1 %v905_v10 }
  0x42   : > { %162 = vperm.xlu1 %836, %v147_v8  }
  0x44   : > { %165 = vperm.xlu2 %834, %v148_v9  }
  0x72   : > { %v356_v12 = vpop.permute.xlu2 %355 }
  0x73   : > { %vm364_vm6 = vcmp.eq.s32.totalorder %v356_v12, %v997_v16 }
  0x74   : > { %v761_v30 = vsel %vm364_vm6, 1.0, %v906_v19 }
  0x7c   : > { %v226_v13 = vpop.permute.xlu2 %225 }
  0x7d   : > { %vm234_vm3 = vcmp.eq.s32.totalorder %v226_v13, %v997_v16 }
  0x7e   : > { %v745_v23 = vsel %vm234_vm3, 1.0, %v906_v19  ;;  %vm629_vm3 = vcmask 785408  }
  0x85   : > { %v359_v15 = vpop.permute.xlu2 %358 }
  0x86   : > { %vm365_vm10 = vcmp.eq.s32.totalorder %v359_v15, %v997_v16 }
  0x87   : > { %v762_v36 = vsel %vm365_vm10, 1.0, %v906_v19 }
  0x89   : > { %v223_v17 = vpop.permute.xlu1 %222  ;;  %v288_v18 = vpop.permute.xlu0 %287 }
  0x8a   : > { %vm233_vm1 = vcmp.eq.s32.totalorder %v223_v17, %v997_v16  ;;  %vm298_vm2 = vcmp.eq.s32.totalorder %v288_v18, %v997_v16 }
  0x8b   : > { %v744_v20 = vsel %vm233_vm1, 1.0, %v906_v19  ;;  %v752_v21 = vsel %vm298_vm2, 1.0, %v906_v19  ;;  %vm624_vm2 = vcmask 523264  }
  0x8c   : > { %748 = vmatmul.msk.f32.vlgmr.msra.gmra.mxu1 %vm179_vm0, %v744_v20  ;;  %756 = vmatmul.msk.f32.vlgmr.msra.gmra.mxu2 %vm179_vm0, %v752_v21 }
  0x8d   : > { %v362_v22 = vpop.permute.xlu2 %361 }
  0x8e   : > { %vm366_vm13 = vcmp.eq.s32.totalorder %v362_v22, %v997_v16 }
  0x8f   : > { %v763_v40 = vsel %vm366_vm13, 1.0, %v906_v19 }
  0x92   : > { %v291_v24 = vpop.permute.xlu1 %290  ;;  %v353_v25 = vpop.permute.xlu0 %352 }
  0x93   : > { %vm299_vm4 = vcmp.eq.s32.totalorder %v291_v24, %v997_v16  ;;  %vm363_vm5 = vcmp.eq.s32.totalorder %v353_v25, %v997_v16 }
  0x94   : > { %v753_v26 = vsel %vm299_vm4, 1.0, %v906_v19  ;;  %v760_v27 = vsel %vm363_vm5, 1.0, %v906_v19  ;;  %749 = vmatmul.msk.f32.gmra.mxu1 %vm179_vm0, %v745_v23 }
  0x95   : > { %757 = vmatmul.msk.f32.gmra.mxu2 %vm179_vm0, %v753_v26  ;;  %764 = vmatmul.msk.f32.vlgmr.msra.gmra.mxu3 %vm179_vm0, %v760_v27 }
  0x96   : > { %v157_v28 = vpop.permute.xlu2 %156 }
  0x97   : > { %vm167_vm7 = vcmp.eq.s32.totalorder %v157_v28, %v997_v16 }
  0x98   : > { %v736_v29 = vsel %vm167_vm7, 1.0, %v906_v19 }
  0x99   : > { %740 = vmatmul.msk.f32.vlgmr.msra.gmra.mxu0 %vm179_vm0, %v736_v29 }
  0x9a   : > { %v294_v31 = vpop.permute.xlu1 %293 }
  0x9b   : > { %vm300_vm8 = vcmp.eq.s32.totalorder %v294_v31, %v997_v16  ;;  %v229_v32 = vpop.permute.xlu0 %228 }
  0x9c   : > { %v754_v33 = vsel %vm300_vm8, 1.0, %v906_v19  ;;  %vm235_vm9 = vcmp.eq.s32.totalorder %v229_v32, %v997_v16 }
  0x9d   : > { %758 = vmatmul.msk.f32.gmra.mxu2 %vm179_vm0, %v754_v33  ;;  %765 = vmatmul.msk.f32.gmra.mxu3 %vm179_vm0, %v761_v30  ;;  %v746_v34 = vsel %vm235_vm9, 1.0, %v906_v19 }
  0x9e   : > { %750 = vmatmul.msk.f32.gmra.mxu1 %vm179_vm0, %v746_v34  ;;  %v166_v45 = vpop.permute.xlu2 %165 }
  0x9f   : > { %vm170_vm1 = vcmp.eq.s32.totalorder %v166_v45, %v997_v16 }
  0xa0   : > { %v739_v46 = vsel %vm170_vm1, 1.0, %v906_v19 }
  0xa2   : > { %v297_v35 = vpop.permute.xlu1 %296 }
  0xa3   : > { %vm301_vm11 = vcmp.eq.s32.totalorder %v297_v35, %v997_v16 }
  0xa4   : > { %v755_v37 = vsel %vm301_vm11, 1.0, %v906_v19  ;;  %v160_v38 = vpop.permute.xlu0 %159 }
  0xa5   : > { %759 = vmatmul.msk.f32.gmra.mxu2 %vm179_vm0, %v755_v37  ;;  %766 = vmatmul.msk.f32.gmra.mxu3 %vm179_vm0, %v762_v36  ;;  %vm168_vm12 = vcmp.eq.s32.totalorder %v160_v38, %v997_v16 }
  0xa6   : > { %v737_v39 = vsel %vm168_vm12, 1.0, %v906_v19 }
  0xa7   : > { %741 = vmatmul.msk.f32.gmra.mxu0 %vm179_vm0, %v737_v39 }
  0xab   : > { %v232_v41 = vpop.permute.xlu1 %231 }
  0xac   : > { %vm236_vm14 = vcmp.eq.s32.totalorder %v232_v41, %v997_v16 }
  0xad   : > { %767 = vmatmul.msk.f32.gmra.mxu3 %vm179_vm0, %v763_v40  ;;  %v747_v42 = vsel %vm236_vm14, 1.0, %v906_v19 }
  0xae   : > { %751 = vmatmul.msk.f32.gmra.mxu1 %vm179_vm0, %v747_v42 }
  0xb4   : > { %v163_v43 = vpop.permute.xlu1 %162 }
  0xb5   : > { %vm169_vm15 = vcmp.eq.s32.totalorder %v163_v43, %v997_v16 }
  0xb6   : > { %v738_v44 = vsel %vm169_vm15, 1.0, %v906_v19 }
  0xb7   : > { %742 = vmatmul.msk.f32.gmra.mxu0 %vm179_vm0, %v738_v44 }
  0xbf   : > { %743 = vmatmul.msk.f32.gmra.mxu0 %vm179_vm0, %v739_v46 }
 0x109   : > { %v274_v47 = vpop.f32.mrf.mxu1 }
 0x10a   : > { %420 = vrot.lane.b32.xlu1 %v274_v47, %s907_s6 }
 0x10f   : > { %v339_v48 = vpop.f32.mrf.mxu2 }
 0x110   : > { %440 = vrot.lane.b32.xlu2 %v339_v48, %s908_s7 }
 0x111   : > { %v1036_v50 = vpop.f32.mrf.mxu1 }
 0x112   : > { %476 = vrot.lane.b32.xlu1 %v339_v48, %s907_s6 }
 0x116   : > { %v209_v59 = vpop.f32.mrf.mxu0 }
 0x118   : > { %v404_v49 = vpop.f32.mrf.mxu3  ;;  %v342_v52 = vpop.f32.mrf.mxu2 }
 0x119   : > { %492 = vrot.lane.b32.xlu2 %v404_v49, %s908_s7  ;;  %460 = vrot.lane.b32.xlu0 %v404_v49, %s909_s8 }
 0x11b   : > { %v1051_v55 = vpop.f32.mrf.mxu1 }
 0x120   : > { %v407_v51 = vpop.f32.mrf.mxu3  ;;  %v1045_v54 = vpop.f32.mrf.mxu2 }
 0x121   : > { %422 = vrot.lane.b32.xlu2 %v1036_v50, %s907_s6  ;;  %508 = vrot.lane.b32.xlu0 %v404_v49, %s907_s6 }
 0x122   : > { %462 = vrot.lane.b32.xlu1 %v407_v51, %s909_s8 }
 0x124   : > { %v212_v8 = vpop.f32.mrf.mxu0 }
 0x128   : > { %v410_v53 = vpop.f32.mrf.mxu3  ;;  %v1059_v57 = vpop.f32.mrf.mxu2 }
 0x129   : > { %478 = vrot.lane.b32.xlu2 %v342_v52, %s907_s6  ;;  %442 = vrot.lane.b32.xlu0 %v342_v52, %s908_s7 }
 0x12a   : > { %510 = vrot.lane.b32.xlu1 %v407_v51, %s907_s6 }
 0x12b   : > { %v1057_v56 = vpop.f32.mrf.mxu1 }
 0x130   : > { %v413_v58 = vpop.f32.mrf.mxu3 }
 0x131   : > { %494 = vrot.lane.b32.xlu0 %v407_v51, %s908_s7  ;;  %464 = vrot.lane.b32.xlu2 %v410_v53, %s909_s8 }
 0x132   : > { %444 = vrot.lane.b32.xlu1 %v1045_v54, %s908_s7 }
 0x134   : > { %v215_v19 = vpop.f32.mrf.mxu0 }
 0x139   : > { %512 = vrot.lane.b32.xlu2 %v410_v53, %s907_s6  ;;  %424 = vrot.lane.b32.xlu0 %v1051_v55, %s907_s6 }
 0x13a   : > { %496 = vrot.lane.b32.xlu1 %v410_v53, %s908_s7 }
 0x13c   : > { %v218_v31 = vpop.f32.mrf.mxu0 }
 0x141   : > { %446 = vrot.lane.b32.xlu2 %v1059_v57, %s908_s7  ;;  %480 = vrot.lane.b32.xlu0 %v1045_v54, %s907_s6 }
 0x142   : > { %426 = vrot.lane.b32.xlu1 %v1057_v56, %s907_s6 }
 0x149   : > { %498 = vrot.lane.b32.xlu2 %v413_v58, %s908_s7  ;;  %466 = vrot.lane.b32.xlu0 %v413_v58, %s909_s8 }
 0x14a   : > { %482 = vrot.lane.b32.xlu1 %v1059_v57, %s907_s6 }
 0x151   : > { %514 = vrot.lane.b32.xlu0 %v413_v58, %s907_s6 }
 0x16a   : > { %v441_v60 = vpop.permute.xlu2 %440 }
 0x16b   : > { %v452_v61 = vmul.f32 %v441_v60, %v209_v59 }
 0x16d   : > { %544 = vrot.lane.b32.xlu2 %v452_v61, %s909_s8 }
 0x173   : > { %v493_v0 = vpop.permute.xlu2 %492 }
 0x174   : > { %v504_v1 = vmul.f32 %v493_v0, %v274_v47 }
 0x17b   : > { %v423_v2 = vpop.permute.xlu2 %422 }
 0x17c   : > { %v421_v62 = vpop.permute.xlu1 %420  ;;  %v433_v14 = vmul.f32 %v423_v2, %v212_v8 }
 0x17d   : > { %v432_v63 = vmul.f32 %v421_v62, %v209_v59 }
 0x17f   : > { %528 = vrot.lane.b32.xlu1 %v432_v63, %s909_s8 }
 0x183   : > { %v479_v6 = vpop.permute.xlu2 %478 }
 0x184   : > { %v477_v4 = vpop.permute.xlu1 %476  ;;  %v489_v45 = vmul.f32 %v479_v6, %v1036_v50 }
 0x185   : > { %v488_v9 = vmul.f32 %v477_v4, %v274_v47 }
 0x187   : > { %592 = vrot.lane.b32.xlu1 %v504_v1, %s907_s6 }
 0x18b   : > { %v461_v3 = vpop.permute.xlu0 %460  ;;  %v465_v15 = vpop.permute.xlu2 %464 }
 0x18c   : > { %v472_v5 = vmul.f32 %v461_v3, %v209_v59  ;;  %v474_v26 = vmul.f32 %v465_v15, %v215_v19 }
 0x18e   : > { %560 = vrot.lane.b32.xlu0 %v472_v5, %s909_s8 }
 0x193   : > { %v509_v7 = vpop.permute.xlu0 %508  ;;  %v513_v24 = vpop.permute.xlu2 %512 }
 0x194   : > { %v463_v10 = vpop.permute.xlu1 %462  ;;  %v520_v11 = vmul.f32 %v509_v7, %v339_v48  ;;  %v522_v29 = vmul.f32 %v513_v24, %v1045_v54 }
 0x195   : > { %v473_v12 = vmul.f32 %v463_v10, %v212_v8 }
 0x196   : > { %576 = vrot.lane.b32.xlu0 %v488_v9, %s907_s6  ;;  %608 = vrot.lane.b32.xlu2 %v520_v11, %s908_s7 }
 0x197   : > { %562 = vrot.lane.b32.xlu1 %v473_v12, %s909_s8 }
 0x19b   : > { %v443_v13 = vpop.permute.xlu0 %442  ;;  %v447_v30 = vpop.permute.xlu2 %446 }
 0x19c   : > { %v511_v16 = vpop.permute.xlu1 %510  ;;  %v453_v17 = vmul.f32 %v443_v13, %v212_v8  ;;  %v455_v33 = vmul.f32 %v447_v30, %v218_v31 }
 0x19d   : > { %v521_v20 = vmul.f32 %v511_v16, %v342_v52 }
 0x19e   : > { %530 = vrot.lane.b32.xlu2 %v433_v14, %s909_s8  ;;  %546 = vrot.lane.b32.xlu0 %v453_v17, %s909_s8 }
 0x1a3   : > { %v495_v18 = vpop.permute.xlu0 %494  ;;  %v499_v37 = vpop.permute.xlu2 %498 }
 0x1a4   : > { %v445_v21 = vpop.permute.xlu1 %444  ;;  %v505_v22 = vmul.f32 %v495_v18, %v1036_v50  ;;  %v507_v40 = vmul.f32 %v499_v37, %v1057_v56 }
 0x1a5   : > { %v454_v23 = vmul.f32 %v445_v21, %v215_v19 }
 0x1a6   : > { %610 = vrot.lane.b32.xlu0 %v521_v20, %s908_s7  ;;  %594 = vrot.lane.b32.xlu2 %v505_v22, %s907_s6 }
 0x1a7   : > { %548 = vrot.lane.b32.xlu1 %v454_v23, %s909_s8 }
 0x1ab   : > { %v425_v25 = vpop.permute.xlu0 %424 }
 0x1ac   : > { %v497_v27 = vpop.permute.xlu1 %496  ;;  %v434_v28 = vmul.f32 %v425_v25, %v215_v19 }
 0x1ad   : > { %v506_v34 = vmul.f32 %v497_v27, %v1051_v55 }
 0x1ae   : > { %564 = vrot.lane.b32.xlu2 %v474_v26, %s909_s8  ;;  %532 = vrot.lane.b32.xlu0 %v434_v28, %s909_s8 }
 0x1af   : > { %612 = vrot.lane.b32.xlu1 %v522_v29, %s908_s7 }
 0x1b3   : > { %v481_v32 = vpop.permute.xlu0 %480 }
 0x1b4   : > { %v427_v35 = vpop.permute.xlu1 %426  ;;  %v490_v46 = vmul.f32 %v481_v32, %v1051_v55 }
 0x1b5   : > { %v435_v36 = vmul.f32 %v427_v35, %v218_v31 }
 0x1b6   : > { %550 = vrot.lane.b32.xlu2 %v455_v33, %s909_s8  ;;  %596 = vrot.lane.b32.xlu0 %v506_v34, %s907_s6 }
 0x1b7   : > { %534 = vrot.lane.b32.xlu1 %v435_v36, %s909_s8 }
 0x1bb   : > { %v467_v38 = vpop.permute.xlu0 %466 }
 0x1bc   : > { %v475_v39 = vmul.f32 %v467_v38, %v218_v31  ;;  %v483_v41 = vpop.permute.xlu1 %482 }
 0x1bd   : > { %v491_v43 = vmul.f32 %v483_v41, %v1057_v56 }
 0x1be   : > { %566 = vrot.lane.b32.xlu0 %v475_v39, %s909_s8 }
 0x1bf   : > { %598 = vrot.lane.b32.xlu1 %v507_v40, %s907_s6 }
 0x1c3   : > { %v515_v42 = vpop.permute.xlu0 %514 }
 0x1c4   : > { %v523_v44 = vmul.f32 %v515_v42, %v1059_v57 }
 0x1c6   : > { %582 = vrot.lane.b32.xlu0 %v491_v43, %s907_s6  ;;  %614 = vrot.lane.b32.xlu2 %v523_v44, %s908_s7 }
 0x1c7   : > { %578 = vrot.lane.b32.xlu1 %v489_v45, %s907_s6  ;;  %v545_v47 = vpop.permute.xlu2 %544 }
 0x1ce   : > { %580 = vrot.lane.b32.xlu2 %v490_v46, %s907_s6 }
 0x1f0   : > { %v609_v48 = vpop.permute.xlu2 %608 }
 0x1f1   : > { %v529_v49 = vpop.permute.xlu1 %528 }
 0x1f2   : > { %v620_v56 = vsel %vm179_vm0, %v529_v49, %v545_v47 }
 0x1f8   : > { %v531_v52 = vpop.permute.xlu2 %530 }
 0x1f9   : > { %v593_v51 = vpop.permute.xlu1 %592 }
 0x1fa   : > { %v634_v50 = vsel %vm179_vm0, %v593_v51, %v609_v48 }
 0x1fb   : > { %v638_v53 = vsel %vm624_vm2, %v634_v50, 0.0 }
 0x1fc   : > { %643 = vst [vmem:[%s1109_s17 + $0x8] sm:$0xff] %v638_v53 }
 0x200   : > { %v561_v54 = vpop.permute.xlu0 %560  ;;  %v595_v55 = vpop.permute.xlu2 %594 }
 0x201   : > { %v625_v57 = vsel %vm624_vm2, %v620_v56, %v561_v54 }
 0x208   : > { %v577_v58 = vpop.permute.xlu0 %576  ;;  %v565_v60 = vpop.permute.xlu2 %564 }
 0x209   : > { %v630_v59 = vsel %vm629_vm3, %v625_v57, %v577_v58  ;;  %v563_v62 = vpop.permute.xlu1 %562 }
 0x20a   : > { %642 = vst [vmem:[%s1109_s17] sm:$0xff] %v630_v59 }
 0x210   : > { %v547_v61 = vpop.permute.xlu0 %546  ;;  %v551_v63 = vpop.permute.xlu2 %550 }
 0x211   : > { %v621_v19 = vsel %vm179_vm0, %v531_v52, %v547_v61 }
 0x212   : > { %v626_v24 = vsel %vm624_vm2, %v621_v19, %v563_v62 }
 0x218   : > { %v611_v0 = vpop.permute.xlu0 %610 }
 0x219   : > { %v549_v1 = vpop.permute.xlu1 %548  ;;  %v635_v2 = vsel %vm179_vm0, %v595_v55, %v611_v0 }
 0x21a   : > { %v639_v3 = vsel %vm624_vm2, %v635_v2, 0.0 }
 0x21b   : > { %645 = vst [vmem:[%s1109_s17 + $0x18] sm:$0xff] %v639_v3 }
 0x220   : > { %v615_v4 = vpop.permute.xlu2 %614  ;;  %v533_v5 = vpop.permute.xlu0 %532 }
 0x221   : > { %v613_v6 = vpop.permute.xlu1 %612  ;;  %v622_v7 = vsel %vm179_vm0, %v533_v5, %v549_v1 }
 0x222   : > { %v627_v9 = vsel %vm624_vm2, %v622_v7, %v565_v60 }
 0x228   : > { %v581_v8 = vpop.permute.xlu2 %580  ;;  %v597_v10 = vpop.permute.xlu0 %596 }
 0x229   : > { %v535_v11 = vpop.permute.xlu1 %534  ;;  %v632_v12 = vsel %vm629_vm3, %v627_v9, %v581_v8  ;;  %v636_v13 = vsel %vm179_vm0, %v597_v10, %v613_v6 }
 0x22a   : > { %646 = vst [vmem:[%s1109_s17 + $0x20] sm:$0xff] %v632_v12  ;;  %v640_v14 = vsel %vm624_vm2, %v636_v13, 0.0  ;;  %v623_v20 = vsel %vm179_vm0, %v535_v11, %v551_v63 }
 0x22b   : > { %647 = vst [vmem:[%s1109_s17 + $0x28] sm:$0xff] %v640_v14 }
 0x230   : > { %v567_v15 = vpop.permute.xlu0 %566 }
 0x231   : > { %v599_v16 = vpop.permute.xlu1 %598  ;;  %v628_v21 = vsel %vm624_vm2, %v623_v20, %v567_v15 }
 0x232   : > { %v637_v17 = vsel %vm179_vm0, %v599_v16, %v615_v4 }
 0x233   : > { %v641_v18 = vsel %vm624_vm2, %v637_v17, 0.0 }
 0x234   : > { %649 = vst [vmem:[%s1109_s17 + $0x38] sm:$0xff] %v641_v18 }
 0x238   : > { %v583_v22 = vpop.permute.xlu0 %582 }
 0x239   : > { %v579_v23 = vpop.permute.xlu1 %578  ;;  %v633_v25 = vsel %vm629_vm3, %v628_v21, %v583_v22 }
 0x23a   : > { %v631_v26 = vsel %vm629_vm3, %v626_v24, %v579_v23  ;;  %648 = vst [vmem:[%s1109_s17 + $0x30] sm:$0xff] %v633_v25 }
 0x23b   : > { %644 = vst [vmem:[%s1109_s17 + $0x10] sm:$0xff] %v631_v26 }
 0x23c   : > { %865 = shalt.err (!%p862_p3)
}
 0x23d   : > { %s910_s6 = smov 256   ;;  %s911_s7 = smov 16  }
 0x23e   : > { %776 = dma.vmem_to_hbm [thread:$0]  (%p965_p5), %s665_s25, 1024, %s667_s26, %s651_s13, %s910_s6, %s910_s6, %s911_s7  }
 0x23f PF: > { %p782_p4 = scmp.ge.s32.totalorder %s900_s12, 2  ;;  %s681_s8 = sand.u32 1, %s888_s9  }
 0x240   : > { %s682_s14 = scalar_lea.sflag [#allocation3], %s681_s8 }
 0x241   : > { %p779_p7 = pnand %p782_p4, %p969_p6 }
 0x243   : > { %p780_p8 = pneg %p779_p7 }
 0x245   : > { %883 = dma.done.wait (%p780_p8), %s682_s14, 1024  }
 0x246   : > { %885 = vsyncadd (%p780_p8), %s682_s14, 4294966272  ;;  %p12_p9 = scmp.ge.s32.totalorder %s952_s15, 4   ;;  %s1176_s9 = smov %s892_s10 }
 0x247   : > { %s1177_s10 = smov %s896_s11  ;;  %s1178_s11 = smov %s963_s18 }
 0x248   : > { %s1179_s12 = smov %s952_s15  ;;  %14 = sbr.rel (!%p12_p9) target bundleno = 3 (0x3), region = 63 }
 0x24d   :  { %688 = vsyncpa [#allocation3], 1 }
 0x24e   :  { %690 = vsyncpa [#allocation3 + $0x1], 1 }

</bundles_post_ra>
